<compile_context>
chip_gen: v7x
topology: tpu7x:2x2x1
jax: 0.10.0
libtpu: 0.0.40
codegen_flags: <defaults>
</compile_context>

<pallas_src>
import jax
import jax.numpy as jnp
from jax.experimental import pallas as pl
from jax.experimental.pallas import tpu as pltpu

LANE = 128           # TPU lane width (last dim)
SUBLANE_BF16 = 16    # bf16 packs 16 sublanes per vreg


def _round_up(n, m):
    return ((n + m - 1) // m) * m


# ---------------------------------------------------------------- kernel -----

def _fused_chain_kernel(x_ref, w_ref, o_ref):
    # x_ref : (S, Bp, Kp) f32  per-step LHS slab:
    #         lanes [0:H)   = 0 (state slot, filled in-kernel)
    #         lanes [H:H+Din) = x_s,  lane [H+Din] = 1.0 (bias lane), rest 0
    # w_ref : (S, Kp, Hp) bf16 stacked [Ws ; Wx ; b] (init step: Ws rows = 0)
    # o_ref : (S, Bp, Hp) f32  stacked outputs (state after each step)
    S, Bp, Kp = x_ref.shape
    Hp = o_ref.shape[-1]

    state = jnp.zeros((Bp, Hp), jnp.float32)   # no state before the init step
    for s in range(S):                         # S is static & small -> unrolled
        carried = state
        if Kp > Hp:  # not taken at demo shapes (Kp == Hp == 128)
            carried = jnp.pad(carried, ((0, 0), (0, Kp - Hp)))
        # state lanes [H:Hp) are guaranteed zero (zero-padded weight columns),
        # so a plain add places state into lanes [0:H) next to x_s / bias lane.
        lhs = (x_ref[s] + carried).astype(jnp.bfloat16)
        acc = jnp.dot(lhs, w_ref[s], preferred_element_type=jnp.float32)
        state = jnp.maximum(acc, 0.0)          # relu, f32
        o_ref[s] = state


# -------------------------------------------------------- one-time packing ---

def prepare_params(params):
    """Pack + pad weights/biases once (hoisted out of the per-call path)."""
    Din, H = params["w_init"].shape
    num_blocks = len(params["ws"])
    S = num_blocks + 1
    Hp = _round_up(H, LANE)
    Kp = _round_up(H + Din + 1, LANE)          # +1 for the bias lane

    w = jnp.zeros((S, Kp, Hp), jnp.float32)
    # init step: state rows stay zero, x rows = W_init, bias row = b_init
    w = w.at[0, H:H + Din, :H].set(params["w_init"])
    w = w.at[0, H + Din, :H].set(params["b_init"].reshape(-1))
    for i in range(num_blocks):
        w = w.at[i + 1, :H, :H].set(params["ws"][i])
        w = w.at[i + 1, H:H + Din, :H].set(params["wx"][i])
        w = w.at[i + 1, H + Din, :H].set(params["b"][i].reshape(-1))

    return {"w_stack": w.astype(jnp.bfloat16),
            "H": H, "Din": Din, "S": S, "Hp": Hp, "Kp": Kp}


# --------------------------------------------------------------- wrapper -----

def progressive_with_state_init(xs, packed):
    """Mirror of ProgressiveWithStateInit.forward.

    xs: list of (B, Din) arrays; xs[0] feeds `initial`, xs[1:] feed the blocks.
    Returns [state, out_0, out_1, ...] (ListCollector result), each (B, H) f32.
    """
    H, Din, S = packed["H"], packed["Din"], packed["S"]
    Hp, Kp = packed["Hp"], packed["Kp"]
    assert len(xs) == S
    B = xs[0].shape[0]
    Bp = _round_up(B, SUBLANE_BF16)

    # Per-call: pack inputs into the lane-compact LHS slab (f32; cast to bf16
    # happens in-kernel right before the dot).
    x = jnp.stack(xs).astype(jnp.float32)                        # (S, B, Din)
    x_slab = jnp.zeros((S, Bp, Kp), jnp.float32)
    x_slab = x_slab.at[:, :B, H:H + Din].set(x)
    x_slab = x_slab.at[:, :B, H + Din].set(1.0)                  # bias lane

    out = pl.pallas_call(
        _fused_chain_kernel,
        out_shape=jax.ShapeDtypeStruct((S, Bp, Hp), jnp.float32),
        grid_spec=pltpu.PrefetchScalarGridSpec(
            num_scalar_prefetch=0,
            grid=(1,),                                   # single launch
            in_specs=[
                pl.BlockSpec((S, Bp, Kp), lambda i: (0, 0, 0)),
                pl.BlockSpec((S, Kp, Hp), lambda i: (0, 0, 0)),
            ],
            out_specs=pl.BlockSpec((S, Bp, Hp), lambda i: (0, 0, 0)),
        ),
        compiler_params=pltpu.CompilerParams(
            # single trivial axis; recurrence lives inside the kernel body
            dimension_semantics=("arbitrary",),
            # explicit budget (safe on v5e/v6e/v7x); usage here is ~200 KiB
            vmem_limit_bytes=16 * 1024 * 1024,
        ),
    )(x_slab, packed["w_stack"])

    # slice the padded stacked slab back to the ListCollector result
    return [out[i, :B, :H] for i in range(S)]


# ------------------------------------------------------------------ main -----

if __name__ == "__main__":
    B, D_IN, H = 8, 32, 32
    NUM_BLOCKS = 3                       # progressive has 3 blocks
    NUM_INPUTS = NUM_BLOCKS + 1          # xs[0] for initial, xs[1:] for blocks

    key = jax.random.PRNGKey(0)
    keys = jax.random.split(key, 2 + 3 * NUM_BLOCKS + NUM_INPUTS)

    params = {
        "w_init": 0.1 * jax.random.normal(keys[0], (D_IN, H), jnp.float32),
        "b_init": 0.1 * jax.random.normal(keys[1], (1, H), jnp.float32),
        "ws": [0.1 * jax.random.normal(keys[2 + 3 * i], (H, H), jnp.float32)
               for i in range(NUM_BLOCKS)],
        "wx": [0.1 * jax.random.normal(keys[3 + 3 * i], (D_IN, H), jnp.float32)
               for i in range(NUM_BLOCKS)],
        "b": [0.1 * jax.random.normal(keys[4 + 3 * i], (1, H), jnp.float32)
              for i in range(NUM_BLOCKS)],
    }

    xs = [jax.random.normal(keys[2 + 3 * NUM_BLOCKS + i], (B, D_IN), jnp.float32)
          for i in range(NUM_INPUTS)]

    packed = prepare_params(params)      # one-time weight packing (hoisted)
    outs = progressive_with_state_init(xs, packed)
    for o in outs:
        jax.block_until_ready(o)

    # Reference in plain JAX mirroring the kernel's numerics
    # (bf16 inputs/weights/bias at the dot, f32 accumulation, bf16 state carry).
    def bf(a):
        return a.astype(jnp.bfloat16)

    state = jnp.maximum(
        jnp.dot(bf(xs[0]), bf(params["w_init"]),
                preferred_element_type=jnp.float32)
        + bf(params["b_init"]).astype(jnp.float32), 0.0)
    ref_outs = [state]
    for i in range(NUM_BLOCKS):
        acc = (jnp.dot(bf(state), bf(params["ws"][i]),
                       preferred_element_type=jnp.float32)
               + jnp.dot(bf(xs[i + 1]), bf(params["wx"][i]),
                         preferred_element_type=jnp.float32)
               + bf(params["b"][i]).astype(jnp.float32))
        state = jnp.maximum(acc, 0.0)
        ref_outs.append(state)

    for got, ref in zip(outs, ref_outs):
        assert got.shape == (B, H)
        assert jnp.allclose(got, ref, atol=2e-3, rtol=2e-3), (
            float(jnp.max(jnp.abs(got - ref))))

    print("KERNEL_OK")
</pallas_src>

<mosaic_0001>
module attributes {stable_mosaic.version = 11 : i64} {
  func.func @_fused_chain_kernel(%arg0: i32, %arg1: memref<4x16x128xf32, #tpu.memory_space<vmem>>, %arg2: memref<4x128x128xbf16, #tpu.memory_space<vmem>>, %arg3: memref<4x16x128xf32, #tpu.memory_space<vmem>>) attributes {dimension_semantics = [#tpu.dimension_semantics<arbitrary>], iteration_bounds = array<i64: 1>, scalar_prefetch = 0 : i64, scratch_operands = 0 : i64, tpu.core_type = #tpu.core_type<tc>, window_params = [{pipeline_mode = #tpu.pipeline_mode<synchronous>, transform_indices = @transform_0, window_bounds = array<i64: 4, 16, 128>}, {pipeline_mode = #tpu.pipeline_mode<synchronous>, transform_indices = @transform_1, window_bounds = array<i64: 4, 128, 128>}, {pipeline_mode = #tpu.pipeline_mode<synchronous>, transform_indices = @transform_2, window_bounds = array<i64: 4, 16, 128>}]} {
    %cst = arith.constant 0.000000e+00 : f32
    %0 = vector.broadcast %cst : f32 to vector<16x128xf32>
    %c0 = arith.constant 0 : index
    %c0_0 = arith.constant 0 : index
    %c0_1 = arith.constant 0 : index
    %1 = vector.load %arg1[%c0, %c0_0, %c0_1] : memref<4x16x128xf32, #tpu.memory_space<vmem>>, vector<1x16x128xf32>
    %2 = vector.shape_cast %1 : vector<1x16x128xf32> to vector<16x128xf32>
    %3 = arith.addf %2, %0 : vector<16x128xf32>
    %4 = arith.truncf %3 : vector<16x128xf32> to vector<16x128xbf16>
    %c0_2 = arith.constant 0 : index
    %c0_3 = arith.constant 0 : index
    %c0_4 = arith.constant 0 : index
    %5 = vector.load %arg2[%c0_2, %c0_3, %c0_4] : memref<4x128x128xbf16, #tpu.memory_space<vmem>>, vector<1x128x128xbf16>
    %6 = vector.shape_cast %5 : vector<1x128x128xbf16> to vector<128x128xbf16>
    %cst_5 = arith.constant dense<0.000000e+00> : vector<16x128xf32>
    %7 = tpu.matmul %4, %6, %cst_5 {dimension_numbers = #tpu.dot_dimension_numbers<[1], [0], [0], [1], [0, 0, 1, 1], [], []>} : vector<16x128xbf16>, vector<128x128xbf16>, vector<16x128xf32> -> vector<16x128xf32>
    %cst_6 = arith.constant 0.000000e+00 : f32
    %8 = vector.broadcast %cst_6 : f32 to vector<16x128xf32>
    %9 = arith.maximumf %7, %8 : vector<16x128xf32>
    %c0_7 = arith.constant 0 : index
    %c0_8 = arith.constant 0 : index
    %c0_9 = arith.constant 0 : index
    %10 = vector.load %arg3[%c0_7, %c0_8, %c0_9] : memref<4x16x128xf32, #tpu.memory_space<vmem>>, vector<1x16x128xf32>
    %11 = vector.shape_cast %10 : vector<1x16x128xf32> to vector<16x128xf32>
    %12 = vector.shape_cast %9 : vector<16x128xf32> to vector<1x16x128xf32>
    tpu.vector_store %arg3[%c0_7, %c0_8, %c0_9], %12 {strides = array<i32>} : memref<4x16x128xf32, #tpu.memory_space<vmem>>, vector<1x16x128xf32>,
    %c1 = arith.constant 1 : index
    %c0_10 = arith.constant 0 : index
    %c0_11 = arith.constant 0 : index
    %13 = vector.load %arg1[%c1, %c0_10, %c0_11] : memref<4x16x128xf32, #tpu.memory_space<vmem>>, vector<1x16x128xf32>
    %14 = vector.shape_cast %13 : vector<1x16x128xf32> to vector<16x128xf32>
    %15 = arith.addf %14, %9 : vector<16x128xf32>
    %16 = arith.truncf %15 : vector<16x128xf32> to vector<16x128xbf16>
    %c1_12 = arith.constant 1 : index
    %c0_13 = arith.constant 0 : index
    %c0_14 = arith.constant 0 : index
    %17 = vector.load %arg2[%c1_12, %c0_13, %c0_14] : memref<4x128x128xbf16, #tpu.memory_space<vmem>>, vector<1x128x128xbf16>
    %18 = vector.shape_cast %17 : vector<1x128x128xbf16> to vector<128x128xbf16>
    %cst_15 = arith.constant dense<0.000000e+00> : vector<16x128xf32>
    %19 = tpu.matmul %16, %18, %cst_15 {dimension_numbers = #tpu.dot_dimension_numbers<[1], [0], [0], [1], [0, 0, 1, 1], [], []>} : vector<16x128xbf16>, vector<128x128xbf16>, vector<16x128xf32> -> vector<16x128xf32>
    %cst_16 = arith.constant 0.000000e+00 : f32
    %20 = vector.broadcast %cst_16 : f32 to vector<16x128xf32>
    %21 = arith.maximumf %19, %20 : vector<16x128xf32>
    %c1_17 = arith.constant 1 : index
    %c0_18 = arith.constant 0 : index
    %c0_19 = arith.constant 0 : index
    %22 = vector.load %arg3[%c1_17, %c0_18, %c0_19] : memref<4x16x128xf32, #tpu.memory_space<vmem>>, vector<1x16x128xf32>
    %23 = vector.shape_cast %22 : vector<1x16x128xf32> to vector<16x128xf32>
    %24 = vector.shape_cast %21 : vector<16x128xf32> to vector<1x16x128xf32>
    tpu.vector_store %arg3[%c1_17, %c0_18, %c0_19], %24 {strides = array<i32>} : memref<4x16x128xf32, #tpu.memory_space<vmem>>, vector<1x16x128xf32>,
    %c2 = arith.constant 2 : index
    %c0_20 = arith.constant 0 : index
    %c0_21 = arith.constant 0 : index
    %25 = vector.load %arg1[%c2, %c0_20, %c0_21] : memref<4x16x128xf32, #tpu.memory_space<vmem>>, vector<1x16x128xf32>
    %26 = vector.shape_cast %25 : vector<1x16x128xf32> to vector<16x128xf32>
    %27 = arith.addf %26, %21 : vector<16x128xf32>
    %28 = arith.truncf %27 : vector<16x128xf32> to vector<16x128xbf16>
    %c2_22 = arith.constant 2 : index
    %c0_23 = arith.constant 0 : index
    %c0_24 = arith.constant 0 : index
    %29 = vector.load %arg2[%c2_22, %c0_23, %c0_24] : memref<4x128x128xbf16, #tpu.memory_space<vmem>>, vector<1x128x128xbf16>
    %30 = vector.shape_cast %29 : vector<1x128x128xbf16> to vector<128x128xbf16>
    %cst_25 = arith.constant dense<0.000000e+00> : vector<16x128xf32>
    %31 = tpu.matmul %28, %30, %cst_25 {dimension_numbers = #tpu.dot_dimension_numbers<[1], [0], [0], [1], [0, 0, 1, 1], [], []>} : vector<16x128xbf16>, vector<128x128xbf16>, vector<16x128xf32> -> vector<16x128xf32>
    %cst_26 = arith.constant 0.000000e+00 : f32
    %32 = vector.broadcast %cst_26 : f32 to vector<16x128xf32>
    %33 = arith.maximumf %31, %32 : vector<16x128xf32>
    %c2_27 = arith.constant 2 : index
    %c0_28 = arith.constant 0 : index
    %c0_29 = arith.constant 0 : index
    %34 = vector.load %arg3[%c2_27, %c0_28, %c0_29] : memref<4x16x128xf32, #tpu.memory_space<vmem>>, vector<1x16x128xf32>
    %35 = vector.shape_cast %34 : vector<1x16x128xf32> to vector<16x128xf32>
    %36 = vector.shape_cast %33 : vector<16x128xf32> to vector<1x16x128xf32>
    tpu.vector_store %arg3[%c2_27, %c0_28, %c0_29], %36 {strides = array<i32>} : memref<4x16x128xf32, #tpu.memory_space<vmem>>, vector<1x16x128xf32>,
    %c3 = arith.constant 3 : index
    %c0_30 = arith.constant 0 : index
    %c0_31 = arith.constant 0 : index
    %37 = vector.load %arg1[%c3, %c0_30, %c0_31] : memref<4x16x128xf32, #tpu.memory_space<vmem>>, vector<1x16x128xf32>
    %38 = vector.shape_cast %37 : vector<1x16x128xf32> to vector<16x128xf32>
    %39 = arith.addf %38, %33 : vector<16x128xf32>
    %40 = arith.truncf %39 : vector<16x128xf32> to vector<16x128xbf16>
    %c3_32 = arith.constant 3 : index
    %c0_33 = arith.constant 0 : index
    %c0_34 = arith.constant 0 : index
    %41 = vector.load %arg2[%c3_32, %c0_33, %c0_34] : memref<4x128x128xbf16, #tpu.memory_space<vmem>>, vector<1x128x128xbf16>
    %42 = vector.shape_cast %41 : vector<1x128x128xbf16> to vector<128x128xbf16>
    %cst_35 = arith.constant dense<0.000000e+00> : vector<16x128xf32>
    %43 = tpu.matmul %40, %42, %cst_35 {dimension_numbers = #tpu.dot_dimension_numbers<[1], [0], [0], [1], [0, 0, 1, 1], [], []>} : vector<16x128xbf16>, vector<128x128xbf16>, vector<16x128xf32> -> vector<16x128xf32>
    %cst_36 = arith.constant 0.000000e+00 : f32
    %44 = vector.broadcast %cst_36 : f32 to vector<16x128xf32>
    %45 = arith.maximumf %43, %44 : vector<16x128xf32>
    %c3_37 = arith.constant 3 : index
    %c0_38 = arith.constant 0 : index
    %c0_39 = arith.constant 0 : index
    %46 = vector.load %arg3[%c3_37, %c0_38, %c0_39] : memref<4x16x128xf32, #tpu.memory_space<vmem>>, vector<1x16x128xf32>
    %47 = vector.shape_cast %46 : vector<1x16x128xf32> to vector<16x128xf32>
    %48 = vector.shape_cast %45 : vector<16x128xf32> to vector<1x16x128xf32>
    tpu.vector_store %arg3[%c3_37, %c0_38, %c0_39], %48 {strides = array<i32>} : memref<4x16x128xf32, #tpu.memory_space<vmem>>, vector<1x16x128xf32>,
    return
  }
  func.func @transform_0(%arg0: i32) -> (i32, i32, i32) {
    %c0_i32 = arith.constant 0 : i32
    %c0_i32_0 = arith.constant 0 : i32
    %c0_i32_1 = arith.constant 0 : i32
    %c0_i32_2 = arith.constant 0 : i32
    return %c0_i32, %c0_i32_0, %c0_i32_1 : i32, i32, i32
  }
  func.func @transform_1(%arg0: i32) -> (i32, i32, i32) {
    %c0_i32 = arith.constant 0 : i32
    %c0_i32_0 = arith.constant 0 : i32
    %c0_i32_1 = arith.constant 0 : i32
    %c0_i32_2 = arith.constant 0 : i32
    return %c0_i32, %c0_i32_0, %c0_i32_1 : i32, i32, i32
  }
  func.func @transform_2(%arg0: i32) -> (i32, i32, i32) {
    %c0_i32 = arith.constant 0 : i32
    %c0_i32_0 = arith.constant 0 : i32
    %c0_i32_1 = arith.constant 0 : i32
    %c0_i32_2 = arith.constant 0 : i32
    return %c0_i32, %c0_i32_0, %c0_i32_1 : i32, i32, i32
  }
}

</mosaic_0001>

<bundles_post_ra>
// kernel: tpu_custom_call.1
= control target key start
LH: loop header
LB: loop body
LE: loop exit
PB: predicated region body
PF: predicated region fallthrough
CT: control target
= control target key end

     0   :  { %7 = vsyncpa [#allocation3], 0  ;;  %s891_s0 = inlined_call_operand.hbm [shape: f32[4,16,128], index: 0, kind: input, shape index: {}]   ;;  %s892_s1 = inlined_call_operand.hbm [shape: bf16[4,128,128], index: 1, kind: input, shape index: {}]   ;;  %s893_s2 = inlined_call_operand.hbm [shape: f32[4,16,128], index: 2, kind: output, shape index: {}]  }
   0x1   :  { %8 = vsyncpa [#allocation6], 0 }
   0x2   :  { %9 = vsyncpa [#allocation4], 0  ;;  %s785_s9 = smov [#allocation2]   ;;  %s713_s13 = scalar_lea.hbm %s891_s0, 1024 }
   0x3   :  { %s15_s10 = sshll.u32 %s785_s9, 4  ;;  %p714_p0 = scmp.ne.s32.totalorder %s891_s0, %s713_s13  ;;  %s16_s10 = int_to_ptr.vmem [resolvable:$true] %s15_s10 }
   0x4   :  { %p717_p1 = scmp.lt.u32.totalorder %s713_s13, %s891_s0 }
   0x6   :  { %p719_p2 = pnand %p717_p1, %p714_p0 }
   0x8   :  { %722 = shalt.err (!%p719_p2)
}
   0x9   :  { %s723_s18 = scalar_lea.vmem %s16_s10, 1024  ;;  %p728_p4 = scmp.lt.s32.totalorder %s16_s10, %s16_s10 }
   0xa   :  { %p724_p3 = scmp.ne.s32.totalorder %s16_s10, %s723_s18  ;;  %p729_p5 = scmp.lt.s32.totalorder %s723_s18, %s723_s18 }
   0xc   :  { %p730_p6 = por %p729_p5, %p728_p4 }
   0xe   :  { %p731_p7 = pnand %p730_p6, %p724_p3 }
  0x10   :  { %734 = shalt.err (!%p731_p7)
}
  0x11   :  { %s786_s19 = smov 128   ;;  %s787_s20 = smov 8  }
  0x12   :  { %21 = dma.hbm_to_vmem [thread:$0]  %s891_s0, 1024, %s16_s10, [#allocation3], %s786_s19, %s786_s19, %s787_s20  }
  0x13   :  { %s788_s23 = smov [#allocation5]   ;;  %s735_s27 = scalar_lea.hbm %s892_s1, 4096 }
  0x14   :  { %s27_s24 = sshll.u32 %s788_s23, 4  ;;  %p736_p8 = scmp.ne.s32.totalorder %s892_s1, %s735_s27  ;;  %s28_s24 = int_to_ptr.vmem [resolvable:$true] %s27_s24 }
  0x15   :  { %p739_p9 = scmp.lt.u32.totalorder %s735_s27, %s892_s1 }
  0x17   :  { %p741_p10 = pnand %p739_p9, %p736_p8 }
  0x19   :  { %744 = shalt.err (!%p741_p10)
}
  0x1a   :  { %s745_s4 = scalar_lea.vmem %s28_s24, 4096  ;;  %p750_p12 = scmp.lt.s32.totalorder %s28_s24, %s28_s24 }
  0x1b   :  { %p746_p11 = scmp.ne.s32.totalorder %s28_s24, %s745_s4  ;;  %p751_p13 = scmp.lt.s32.totalorder %s745_s4, %s745_s4 }
  0x1d   :  { %p752_p0 = por %p751_p13, %p750_p12 }
  0x1f   :  { %p753_p1 = pnand %p752_p0, %p746_p11 }
  0x21   :  { %756 = shalt.err (!%p753_p1)
}
  0x22   :  { %s789_s0 = smov 64   ;;  %s790_s5 = smov 4  }
  0x23   :  { %33 = dma.hbm_to_vmem [thread:$0]  %s892_s1, 4096, %s28_s24, [#allocation6], %s789_s0, %s789_s0, %s790_s5  }
  0x24   :  { %779 = dma.done.wait [#allocation3], 1024  }
  0x25   :  { %780 = vsyncadd [#allocation3], 4294966272 }
  0x26   :  { %781 = dma.done.wait [#allocation6], 4096  }
  0x27   :  { %782 = vsyncadd [#allocation6], 4294963200  ;;  %v791_v0 = vmov 0.0   ;;  %vm792_vm0 = vmmov 0   ;;  %v681_v1 = vld [vmem:[#allocation5] sm:$0xff]   ;;  %v682_v2 = vld [vmem:[#allocation5 + $0x8] sm:$0xff]  }
  0x28   :  { %592 = vmatprep.subr.bf16.mxu0 %v791_v0  ;;  %608 = vmatprep.mubr.msk.bf16.mxu0 %vm792_vm0, %v791_v0  ;;  %v683_v3 = vld [vmem:[#allocation5 + $0x10] sm:$0xff]   ;;  %v689_v4 = vld [vmem:[#allocation5 + $0x40] sm:$0xff]   ;;  %v684_v5 = vld [vmem:[#allocation5 + $0x18] sm:$0xff]   ;;  %s793_s1 = smov [#allocation7]  }
  0x29   :  { %612 = vmatprep.subr.bf16.mxu1 %v791_v0  ;;  %628 = vmatprep.mubr.msk.bf16.mxu1 %vm792_vm0, %v791_v0  ;;  %v690_v6 = vld [vmem:[#allocation5 + $0x48] sm:$0xff]   ;;  %v685_v7 = vld [vmem:[#allocation5 + $0x20] sm:$0xff]   ;;  %v691_v8 = vld [vmem:[#allocation5 + $0x50] sm:$0xff]   ;;  %s511_s8 = sshll.u32 %s793_s1, 4  ;;  %s512_s8 = int_to_ptr.vmem [resolvable:$true] %s511_s8 }
  0x2a   :  { %593 = vmatpush3.bf16.msra.mxu0 %v681_v1  ;;  %613 = vmatpush3.bf16.msra.mxu1 %v689_v4  ;;  %v686_v9 = vld [vmem:[#allocation5 + $0x28] sm:$0xff]   ;;  %v692_v10 = vld [vmem:[#allocation5 + $0x58] sm:$0xff]   ;;  %v687_v11 = vld [vmem:[#allocation5 + $0x30] sm:$0xff]   ;;  %s757_s9 = scalar_lea.vmem %s512_s8, 1024  ;;  %p762_p3 = scmp.lt.s32.totalorder %s512_s8, %s512_s8 }
  0x2b   :  { %594 = vmatprep.subr.bf16.mxu0 %v791_v0  ;;  %614 = vmatprep.subr.bf16.mxu1 %v791_v0  ;;  %v693_v12 = vld [vmem:[#allocation5 + $0x60] sm:$0xff]   ;;  %v688_v13 = vld [vmem:[#allocation5 + $0x38] sm:$0xff]   ;;  %v42_v15 = vld [vmem:[#allocation2 + $0x8] sm:$0xff]  ;;  %p758_p2 = scmp.ne.s32.totalorder %s512_s8, %s757_s9  ;;  %p763_p4 = scmp.lt.s32.totalorder %s757_s9, %s757_s9 }
  0x2c   :  { %v41_v14 = vld [vmem:[#allocation2] sm:$0xff]  ;;  %v694_v16 = vld [vmem:[#allocation5 + $0x68] sm:$0xff]   ;;  %v695_v18 = vld [vmem:[#allocation5 + $0x70] sm:$0xff]  }
  0x2d   :  { %v45_v17 = vpack.c.bf16 %v42_v15, %v41_v14  ;;  %v696_v19 = vld [vmem:[#allocation5 + $0x78] sm:$0xff]   ;;  %v697_v20 = vld [vmem:[#allocation5 + $0x80] sm:$0xff]   ;;  %v698_v21 = vld [vmem:[#allocation5 + $0x88] sm:$0xff]   ;;  %p764_p5 = por %p763_p4, %p762_p3 }
  0x2e   :  { %595 = vmatpush3.bf16.msra.mxu0 %v682_v2  ;;  %615 = vmatpush3.bf16.msra.mxu1 %v690_v6  ;;  %v699_v22 = vld [vmem:[#allocation5 + $0x90] sm:$0xff]   ;;  %v700_v23 = vld [vmem:[#allocation5 + $0x98] sm:$0xff]   ;;  %v701_v24 = vld [vmem:[#allocation5 + $0xa0] sm:$0xff]  }
  0x2f   :  { %596 = vmatprep.subr.bf16.mxu0 %v791_v0  ;;  %616 = vmatprep.subr.bf16.mxu1 %v791_v0  ;;  %v702_v25 = vld [vmem:[#allocation5 + $0xa8] sm:$0xff]   ;;  %v156_v29 = vld [vmem:[#allocation2 + $0x10] sm:$0xff]  ;;  %v157_v31 = vld [vmem:[#allocation2 + $0x18] sm:$0xff]  ;;  %p765_p6 = pnand %p764_p5, %p758_p2 }
  0x30   :  { %v703_v37 = vld [vmem:[#allocation5 + $0xb0] sm:$0xff]   ;;  %v704_v38 = vld [vmem:[#allocation5 + $0xb8] sm:$0xff]   ;;  %v705_v39 = vld [vmem:[#allocation5 + $0xc0] sm:$0xff]  }
  0x31   :  { %v706_v40 = vld [vmem:[#allocation5 + $0xc8] sm:$0xff]   ;;  %v707_v41 = vld [vmem:[#allocation5 + $0xd0] sm:$0xff]   ;;  %v708_v42 = vld [vmem:[#allocation5 + $0xd8] sm:$0xff]  }
  0x32   :  { %597 = vmatpush3.bf16.msra.mxu0 %v683_v3  ;;  %617 = vmatpush3.bf16.msra.mxu1 %v691_v8  ;;  %v709_v43 = vld [vmem:[#allocation5 + $0xe0] sm:$0xff]   ;;  %v710_v44 = vld [vmem:[#allocation5 + $0xe8] sm:$0xff]   ;;  %v711_v56 = vld [vmem:[#allocation5 + $0xf0] sm:$0xff]  }
  0x33   :  { %598 = vmatprep.subr.bf16.mxu0 %v791_v0  ;;  %618 = vmatprep.subr.bf16.mxu1 %v791_v0  ;;  %v273_v48 = vld [vmem:[#allocation2 + $0x20] sm:$0xff]  ;;  %v274_v50 = vld [vmem:[#allocation2 + $0x28] sm:$0xff]  ;;  %v712_v57 = vld [vmem:[#allocation5 + $0xf8] sm:$0xff]  }
  0x34   :  { %v390_v61 = vld [vmem:[#allocation2 + $0x30] sm:$0xff]  ;;  %v391_v63 = vld [vmem:[#allocation2 + $0x38] sm:$0xff] }
  0x36   :  { %599 = vmatpush3.bf16.msra.mxu0 %v684_v5  ;;  %619 = vmatpush3.bf16.msra.mxu1 %v692_v10 }
  0x37   :  { %600 = vmatprep.subr.bf16.mxu0 %v791_v0  ;;  %620 = vmatprep.subr.bf16.mxu1 %v791_v0 }
  0x3a   :  { %601 = vmatpush3.bf16.msra.mxu0 %v685_v7  ;;  %621 = vmatpush3.bf16.msra.mxu1 %v693_v12 }
  0x3b   :  { %602 = vmatprep.subr.bf16.mxu0 %v791_v0  ;;  %622 = vmatprep.subr.bf16.mxu1 %v791_v0 }
  0x3e   :  { %603 = vmatpush3.bf16.msra.mxu0 %v686_v9  ;;  %623 = vmatpush3.bf16.msra.mxu1 %v694_v16 }
  0x3f   :  { %604 = vmatprep.subr.bf16.mxu0 %v791_v0  ;;  %624 = vmatprep.subr.bf16.mxu1 %v791_v0 }
  0x42   :  { %605 = vmatpush3.bf16.msra.mxu0 %v687_v11  ;;  %625 = vmatpush3.bf16.msra.mxu1 %v695_v18 }
  0x43   :  { %606 = vmatprep.subr.bf16.mxu0 %v791_v0  ;;  %626 = vmatprep.subr.bf16.mxu1 %v791_v0 }
  0x46   :  { %607 = vmatpush3.bf16.msra.mxu0 %v688_v13  ;;  %627 = vmatpush3.bf16.msra.mxu1 %v696_v19 }
  0x47   :  { %632 = vmatprep.subr.bf16.mxu0 %v791_v0  ;;  %652 = vmatprep.subr.bf16.mxu1 %v791_v0 }
  0x49   :  { %609 = vmatmul.mubr.bf16.vlgmr.msra.gmra.mrb[0].mxu0 %v45_v17 }
  0x4a   :  { %648 = vmatprep.mubr.msk.bf16.mxu0 %vm792_vm0, %v791_v0  ;;  %633 = vmatpush3.bf16.msra.mxu0 %v697_v20 }
  0x4b   :  { %634 = vmatprep.subr.bf16.mxu0 %v791_v0 }
  0x4e   :  { %635 = vmatpush3.bf16.msra.mxu0 %v698_v21 }
  0x4f   :  { %636 = vmatprep.subr.bf16.mxu0 %v791_v0 }
  0x52   :  { %637 = vmatpush3.bf16.msra.mxu0 %v699_v22 }
  0x53   :  { %638 = vmatprep.subr.bf16.mxu0 %v791_v0 }
  0x56   :  { %639 = vmatpush3.bf16.msra.mxu0 %v700_v23 }
  0x57   :  { %640 = vmatprep.subr.bf16.mxu0 %v791_v0 }
  0x5a   :  { %641 = vmatpush3.bf16.msra.mxu0 %v701_v24 }
  0x5b   :  { %642 = vmatprep.subr.bf16.mxu0 %v791_v0 }
  0x5e   :  { %643 = vmatpush3.bf16.msra.mxu0 %v702_v25 }
  0x5f   :  { %644 = vmatprep.subr.bf16.mxu0 %v791_v0 }
  0x62   :  { %645 = vmatpush3.bf16.msra.mxu0 %v703_v37 }
  0x63   :  { %646 = vmatprep.subr.bf16.mxu0 %v791_v0 }
  0x66   :  { %647 = vmatpush3.bf16.msra.mxu0 %v704_v38 }
 0x11c   :  { %v144_v26 = vpop.f32.mrb[0].mxu0 }
 0x11d   :  { %v151_v27 = vmax.f32 %v144_v26, 0.0  ;;  %v610_v28 = vpop.f32.mrb[1].mxu0 }
 0x11e   :  { %v147_v30 = vpop.f32.mrb[2].mxu0 }
 0x11f   :  { %153 = vst [vmem:[#allocation7] sm:$0xff] %v151_v27  ;;  %v152_v32 = vmax.f32 %v147_v30, 0.0  ;;  %v611_v33 = vpop.f32.mrb[3].mxu0  ;;  %v158_v34 = vadd.f32 %v156_v29, %v151_v27 }
 0x121   :  { %154 = vst [vmem:[#allocation7 + $0x8] sm:$0xff] %v152_v32  ;;  %v159_v35 = vadd.f32 %v157_v31, %v152_v32 }
 0x123   :  { %v160_v36 = vpack.c.bf16 %v159_v35, %v158_v34 }
 0x125   :  { %629 = vmatmul.mubr.bf16.vlgmr.msra.gmra.mrb[0].mxu1 %v160_v36 }
 0x126   :  { %668 = vmatprep.mubr.msk.bf16.mxu1 %vm792_vm0, %v791_v0  ;;  %653 = vmatpush3.bf16.msra.mxu1 %v705_v39 }
 0x127   :  { %654 = vmatprep.subr.bf16.mxu1 %v791_v0 }
 0x12a   :  { %655 = vmatpush3.bf16.msra.mxu1 %v706_v40 }
 0x12b   :  { %656 = vmatprep.subr.bf16.mxu1 %v791_v0 }
 0x12e   :  { %657 = vmatpush3.bf16.msra.mxu1 %v707_v41 }
 0x12f   :  { %658 = vmatprep.subr.bf16.mxu1 %v791_v0 }
 0x132   :  { %659 = vmatpush3.bf16.msra.mxu1 %v708_v42 }
 0x133   :  { %660 = vmatprep.subr.bf16.mxu1 %v791_v0 }
 0x136   :  { %661 = vmatpush3.bf16.msra.mxu1 %v709_v43 }
 0x137   :  { %662 = vmatprep.subr.bf16.mxu1 %v791_v0 }
 0x13a   :  { %663 = vmatpush3.bf16.msra.mxu1 %v710_v44 }
 0x13b   :  { %664 = vmatprep.subr.bf16.mxu1 %v791_v0 }
 0x13e   :  { %665 = vmatpush3.bf16.msra.mxu1 %v711_v56 }
 0x13f   :  { %666 = vmatprep.subr.bf16.mxu1 %v791_v0 }
 0x142   :  { %667 = vmatpush3.bf16.msra.mxu1 %v712_v57 }
 0x1f8   :  { %v260_v45 = vpop.f32.mrb[0].mxu1 }
 0x1f9   :  { %v267_v46 = vmax.f32 %v260_v45, 0.0  ;;  %v630_v47 = vpop.f32.mrb[1].mxu1 }
 0x1fa   :  { %v263_v49 = vpop.f32.mrb[2].mxu1 }
 0x1fb   :  { %270 = vst [vmem:[#allocation7 + $0x10] sm:$0xff] %v267_v46  ;;  %v268_v51 = vmax.f32 %v263_v49, 0.0  ;;  %v631_v52 = vpop.f32.mrb[3].mxu1  ;;  %v275_v53 = vadd.f32 %v273_v48, %v267_v46 }
 0x1fd   :  { %271 = vst [vmem:[#allocation7 + $0x18] sm:$0xff] %v268_v51  ;;  %v276_v54 = vadd.f32 %v274_v50, %v268_v51 }
 0x1ff   :  { %v277_v55 = vpack.c.bf16 %v276_v54, %v275_v53 }
 0x201   :  { %649 = vmatmul.mubr.bf16.vlgmr.msra.gmra.mrb[4].mxu0 %v277_v55 }
 0x2d4   :  { %v377_v58 = vpop.f32.mrb[4].mxu0 }
 0x2d5   :  { %v384_v59 = vmax.f32 %v377_v58, 0.0  ;;  %v650_v60 = vpop.f32.mrb[5].mxu0 }
 0x2d6   :  { %v380_v62 = vpop.f32.mrb[6].mxu0 }
 0x2d7   :  { %387 = vst [vmem:[#allocation7 + $0x20] sm:$0xff] %v384_v59  ;;  %v385_v1 = vmax.f32 %v380_v62, 0.0  ;;  %v651_v2 = vpop.f32.mrb[7].mxu0  ;;  %v392_v3 = vadd.f32 %v390_v61, %v384_v59 }
 0x2d9   :  { %388 = vst [vmem:[#allocation7 + $0x28] sm:$0xff] %v385_v1  ;;  %v393_v4 = vadd.f32 %v391_v63, %v385_v1 }
 0x2db   :  { %v394_v5 = vpack.c.bf16 %v393_v4, %v392_v3 }
 0x2dd   :  { %669 = vmatmul.mubr.bf16.vlgmr.msra.gmra.mrb[4].mxu1 %v394_v5 }
 0x3b0   :  { %v494_v6 = vpop.f32.mrb[4].mxu1 }
 0x3b1   :  { %v501_v0 = vmax.f32 %v494_v6, 0.0  ;;  %v670_v7 = vpop.f32.mrb[5].mxu1 }
 0x3b2   :  { %v497_v8 = vpop.f32.mrb[6].mxu1 }
 0x3b3   :  { %504 = vst [vmem:[#allocation7 + $0x30] sm:$0xff] %v501_v0  ;;  %v502_v9 = vmax.f32 %v497_v8, 0.0  ;;  %v671_v10 = vpop.f32.mrb[7].mxu1 }
 0x3b5   :  { %505 = vst [vmem:[#allocation7 + $0x38] sm:$0xff] %v502_v9 }
 0x3b6   :  { %768 = shalt.err (!%p765_p6)
}
 0x3b7   :  { %s769_s12 = scalar_lea.hbm %s893_s2, 1024 }
 0x3b8   :  { %p770_p7 = scmp.ne.s32.totalorder %s893_s2, %s769_s12  ;;  %p773_p8 = scmp.lt.u32.totalorder %s769_s12, %s893_s2 }
 0x3ba   :  { %p775_p9 = pnand %p773_p8, %p770_p7 }
 0x3bc   :  { %778 = shalt.err (!%p775_p9)
}
 0x3bd   :  { %517 = dma.vmem_to_hbm [thread:$0]  %s512_s8, 1024, %s893_s2, [#allocation4], %s786_s19, %s786_s19, %s787_s20  }
 0x3be   :  { %783 = dma.done.wait [#allocation4], 1024  }
 0x3bf   :  { %784 = vsyncadd [#allocation4], 4294966272 }
 0x3c0   :  { %521 = vsyncpa [#allocation3], 1 }
 0x3c1   :  { %522 = vsyncpa [#allocation6], 1 }
 0x3c2   :  { %523 = vsyncpa [#allocation4], 1 }

</bundles_post_ra>
